<compile_context>
chip_gen: v5e
topology: v5e:2x2
jax: 0.10.0
libtpu: 0.0.40
codegen_flags: <defaults>
</compile_context>

<pallas_src>
import jax
import jax.numpy as jnp
from jax.experimental import pallas as pl
from jax.experimental.pallas import tpu as pltpu

_MIB = 1024 * 1024
_SMALL_PROBLEM_ELEMS = 1 << 18  # below this, XLA-fused jnp beats a kernel launch


def _round_up(x: int, m: int) -> int:
    return (x + m - 1) // m * m


def _is_v7x() -> bool:
    try:
        kind = jax.devices()[0].device_kind.lower()
        return ("v7" in kind) or ("7x" in kind)
    except Exception:
        return False


def _num_tensorcores() -> int:
    """TensorCores per chip (2 on v7x, else 1). Defensive: defaults to 1."""
    try:
        info = pltpu.get_tpu_info()
        for attr in ("num_cores", "tensorcores_per_chip", "cores_per_chip"):
            v = getattr(info, attr, None)
            if v:
                return int(v)
    except Exception:
        pass
    return 2 if _is_v7x() else 1


def _vmem_capacity_bytes() -> int:
    """Per-TensorCore VMEM capacity, clamped so v7x (64 MiB/TC) is always safe."""
    cap = None
    try:
        cap = getattr(pltpu.get_tpu_info(), "vmem_capacity_bytes", None)
    except Exception:
        cap = None
    if not cap:
        cap = 64 * _MIB
    cap = int(cap)
    # If the query reports per-chip memory on v7x (2 TCs share 128 MiB), clamp
    # to the 64 MiB physical per-TC size; never assume more than 128 MiB.
    return min(cap, 64 * _MIB) if _is_v7x() else min(cap, 128 * _MIB)


def _make_dice_kernel(spatial: int, tk: int, grid_k: int):
    """Build the kernel body. spatial / tk / grid_k are static Python ints."""
    n_sub = tk // 128
    tail = spatial - (grid_k - 1) * tk      # valid columns in the last block
    tail_full = tail // 128                 # fully-valid 128-lane slices (last block)
    tail_rem = tail % 128                   # width of the masked boundary slice
    has_tail = (spatial % tk) != 0

    def _accumulate(pred_ref, target_ref, inter_ref, dom_ref, n_full, rem):
        # Per-slice loads + upcast: everything stays fused in vregs; the
        # accumulators i_part / d_part are (tr, 128) f32 throughout.
        i_part = None
        d_part = None
        for j in range(n_full):
            pj = pred_ref[:, j * 128:(j + 1) * 128].astype(jnp.float32)
            tj = target_ref[:, j * 128:(j + 1) * 128].astype(jnp.float32)
            if i_part is None:
                i_part = pj * tj
                d_part = pj * pj + tj * tj
            else:
                i_part = i_part + pj * tj
                d_part = d_part + pj * pj + tj * tj
        if rem:
            # Single boundary slice: mask lanes beyond the valid extent so OOB
            # (unspecified) columns contribute zero.
            j = n_full
            pj = pred_ref[:, j * 128:(j + 1) * 128].astype(jnp.float32)
            tj = target_ref[:, j * 128:(j + 1) * 128].astype(jnp.float32)
            lane = jax.lax.broadcasted_iota(jnp.int32, pj.shape, 1)
            keep = lane < rem
            pj = jnp.where(keep, pj, 0.0)
            tj = jnp.where(keep, tj, 0.0)
            if i_part is None:
                i_part = pj * tj
                d_part = pj * pj + tj * tj
            else:
                i_part = i_part + pj * tj
                d_part = d_part + pj * pj + tj * tj
        inter_ref[...] += i_part
        dom_ref[...] += d_part

    def kernel(pred_ref, target_ref, inter_ref, dom_ref):
        k = pl.program_id(1)  # spatial (reduction) grid axis, innermost

        @pl.when(k == 0)
        def _():
            inter_ref[...] = jnp.zeros_like(inter_ref)
            dom_ref[...] = jnp.zeros_like(dom_ref)

        if not has_tail:
            # Every tile (including the last) is fully valid: no mask anywhere.
            _accumulate(pred_ref, target_ref, inter_ref, dom_ref, n_sub, 0)
        elif grid_k == 1:
            # Single tile which is also the tail tile.
            _accumulate(pred_ref, target_ref, inter_ref, dom_ref, tail_full, tail_rem)
        else:
            # Hot tiles: unmasked. Last tile: only the boundary slice is masked,
            # fully-OOB slices are skipped.
            @pl.when(k < grid_k - 1)
            def _():
                _accumulate(pred_ref, target_ref, inter_ref, dom_ref, n_sub, 0)

            @pl.when(k == grid_k - 1)
            def _():
                _accumulate(pred_ref, target_ref, inter_ref, dom_ref,
                            tail_full, tail_rem)

    return kernel


def _dice_loss_jnp(pred, target):
    """Reference / small-problem path (matches the torch module, f32 accumulate)."""
    p = pred.astype(jnp.float32)
    t = target.astype(jnp.float32)
    intersection = (p * t).sum(-1).sum(-1)
    domain = (p * p + t * t).sum(-1).sum(-1) + 1e-8
    dice_score = 2.0 * intersection / domain
    return 1.0 - dice_score.mean()


def dice_loss(pred: jax.Array, target: jax.Array, *, use_pallas=None) -> jax.Array:
    """Pallas implementation of DiceLoss.forward (sums over the last two axes)."""
    assert pred.shape == target.shape, (pred.shape, target.shape)
    assert pred.ndim >= 2

    h, w = int(pred.shape[-2]), int(pred.shape[-1])
    spatial = h * w
    rows = 1
    for d in pred.shape[:-2]:
        rows *= int(d)

    if use_pallas is None:
        use_pallas = rows * spatial >= _SMALL_PROBLEM_ELEMS
    if not use_pallas:
        # Launch + per-grid-step overhead would dominate; XLA fuses this trivially.
        return _dice_loss_jnp(pred, target)

    pred2 = pred.reshape(rows, spatial)
    target2 = target.reshape(rows, spatial)

    # ---- Generation-aware, per-TensorCore VMEM budget ------------------------
    vmem_cap = _vmem_capacity_bytes()
    vmem_limit = max(32 * _MIB, min(int(0.75 * vmem_cap), 96 * _MIB))
    pair_bytes = pred2.dtype.itemsize + target2.dtype.itemsize
    input_budget = int(0.40 * vmem_cap)            # 2 inputs x 2 pipeline buffers
    max_block_elems = max(8 * 128, input_budget // (2 * pair_bytes))

    # Sublane granularity of the rows axis (8 for 4B dtypes, 16 for 2B, 32 for 1B).
    min_item = min(pred2.dtype.itemsize, target2.dtype.itemsize)
    row_mult = max(8, 32 // max(1, min_item))
    num_tc = _num_tensorcores()

    # Rows blocking: cap at 128 so the two (tr, 128) f32 accumulators stay well
    # inside the 64-vreg file. Only pre-split rows when megacore can shard it.
    ROW_TILE_CAP = 128
    if rows <= row_mult:
        tr = rows                                   # full extent (allowed even if < 8)
    elif num_tc >= 2:
        tr = min(_round_up(pl.cdiv(rows, 2), row_mult), ROW_TILE_CAP)  # balanced halves
    else:
        tr = min(_round_up(rows, row_mult), ROW_TILE_CAP)
    grid_r = pl.cdiv(rows, tr)

    # Spatial blocking: lane-aligned (multiple of 128) tiles sized from the VMEM
    # budget; the last tile's overhang is masked in-kernel (no wrapper pad, both
    # inputs are read from HBM exactly once).
    tk_cap = 32768 if tr < 32 else 16384
    tk_budget = max(128, ((max_block_elems // max(tr, 1)) // 128) * 128)
    tk = max(128, min(_round_up(spatial, 128), tk_budget, tk_cap))
    grid_k = pl.cdiv(spatial, tk)

    kernel = _make_dice_kernel(spatial, tk, grid_k)

    inter, dom = pl.pallas_call(
        kernel,
        out_shape=(
            jax.ShapeDtypeStruct((rows, 128), jnp.float32),
            jax.ShapeDtypeStruct((rows, 128), jnp.float32),
        ),
        grid_spec=pltpu.PrefetchScalarGridSpec(
            num_scalar_prefetch=0,
            grid=(grid_r, grid_k),
            in_specs=[
                pl.BlockSpec((tr, tk), lambda r, k: (r, k)),
                pl.BlockSpec((tr, tk), lambda r, k: (r, k)),
            ],
            out_specs=[
                pl.BlockSpec((tr, 128), lambda r, k: (r, 0)),
                pl.BlockSpec((tr, 128), lambda r, k: (r, 0)),
            ],
        ),
        compiler_params=pltpu.CompilerParams(
            dimension_semantics=("parallel", "arbitrary"),
            vmem_limit_bytes=vmem_limit,
        ),
    )(pred2, target2)

    # Tiny final cross-lane reduction over (rows, 128) partials in plain JAX.
    intersection = inter.sum(axis=-1)
    domain = dom.sum(axis=-1) + 1e-8
    dice_score = 2.0 * intersection / domain
    return 1.0 - dice_score.mean()


if __name__ == "__main__":
    key = jax.random.PRNGKey(0)
    k1, k2, k3, k4, k5, k6, k7, k8 = jax.random.split(key, 8)

    # Primary spec-consistent shape: batch=2, channels=4, spatial=16x16.
    pred = jax.nn.sigmoid(jax.random.normal(k1, (2, 4, 16, 16), dtype=jnp.float32))
    target = (jax.random.uniform(k2, (2, 4, 16, 16)) > 0.5).astype(jnp.float32)
    ref = _dice_loss_jnp(pred, target)
    loss_auto = jax.block_until_ready(dice_loss(pred, target))              # jnp fallback path
    loss_pallas = jax.block_until_ready(dice_loss(pred, target, use_pallas=True))
    assert jnp.allclose(loss_auto, ref, atol=1e-5, rtol=1e-5), (loss_auto, ref)
    assert jnp.allclose(loss_pallas, ref, atol=1e-5, rtol=1e-5), (loss_pallas, ref)

    # Masked-tail path: spatial = 18*18 = 324 (not a multiple of 128), rows = 15
    # (exercises a partial rows block as well).
    pred2 = jax.nn.sigmoid(jax.random.normal(k3, (3, 5, 18, 18), dtype=jnp.float32))
    target2 = (jax.random.uniform(k4, (3, 5, 18, 18)) > 0.5).astype(jnp.float32)
    l2 = jax.block_until_ready(dice_loss(pred2, target2, use_pallas=True))
    r2 = _dice_loss_jnp(pred2, target2)
    assert jnp.allclose(l2, r2, atol=1e-5, rtol=1e-5), (l2, r2)

    # Small-spatial path: spatial = 10*10 = 100 < 128 (single masked 128-lane slice).
    pred3 = jax.nn.sigmoid(jax.random.normal(k5, (2, 4, 10, 10), dtype=jnp.float32))
    target3 = (jax.random.uniform(k6, (2, 4, 10, 10)) > 0.5).astype(jnp.float32)
    l3 = jax.block_until_ready(dice_loss(pred3, target3, use_pallas=True))
    r3 = _dice_loss_jnp(pred3, target3)
    assert jnp.allclose(l3, r3, atol=1e-5, rtol=1e-5), (l3, r3)

    # Larger shape that takes the Pallas path automatically.
    pred4 = jax.nn.sigmoid(jax.random.normal(k7, (2, 4, 256, 256), dtype=jnp.float32))
    target4 = (jax.random.uniform(k8, (2, 4, 256, 256)) > 0.5).astype(jnp.float32)
    l4 = jax.block_until_ready(dice_loss(pred4, target4))
    r4 = _dice_loss_jnp(pred4, target4)
    assert jnp.allclose(l4, r4, atol=1e-4, rtol=1e-4), (l4, r4)

    print("KERNEL_OK")
</pallas_src>

<mosaic_0001>
module attributes {stable_mosaic.version = 11 : i64} {
  func.func @kernel(%arg0: i32, %arg1: i32, %arg2: memref<8x256xf32, #tpu.memory_space<vmem>>, %arg3: memref<8x256xf32, #tpu.memory_space<vmem>>, %arg4: memref<8x128xf32, #tpu.memory_space<vmem>>, %arg5: memref<8x128xf32, #tpu.memory_space<vmem>>) attributes {dimension_semantics = [#tpu.dimension_semantics<parallel>, #tpu.dimension_semantics<arbitrary>], iteration_bounds = array<i64: 1, 1>, scalar_prefetch = 0 : i64, scratch_operands = 0 : i64, tpu.core_type = #tpu.core_type<tc>, window_params = [{transform_indices = @transform_0, window_bounds = array<i64: 8, 256>}, {transform_indices = @transform_1, window_bounds = array<i64: 8, 256>}, {transform_indices = @transform_2, window_bounds = array<i64: 8, 128>}, {transform_indices = @transform_3, window_bounds = array<i64: 8, 128>}]} {
    %c0_i32 = arith.constant 0 : i32
    %0 = arith.cmpi eq, %arg1, %c0_i32 : i32
    %1 = arith.extui %0 : i1 to i32
    %c0_i32_0 = arith.constant 0 : i32
    %2 = arith.cmpi ne, %1, %c0_i32_0 : i32
    scf.if %2 {
      %cst = arith.constant 0.000000e+00 : f32
      %23 = vector.broadcast %cst : f32 to vector<8x128xf32>
      %c0_15 = arith.constant 0 : index
      %c0_16 = arith.constant 0 : index
      %24 = vector.load %arg4[%c0_15, %c0_16] : memref<8x128xf32, #tpu.memory_space<vmem>>, vector<8x128xf32>
      tpu.vector_store %arg4[%c0_15, %c0_16], %23 {strides = array<i32>} : memref<8x128xf32, #tpu.memory_space<vmem>>, vector<8x128xf32>,
      %cst_17 = arith.constant 0.000000e+00 : f32
      %25 = vector.broadcast %cst_17 : f32 to vector<8x128xf32>
      %c0_18 = arith.constant 0 : index
      %c0_19 = arith.constant 0 : index
      %26 = vector.load %arg5[%c0_18, %c0_19] : memref<8x128xf32, #tpu.memory_space<vmem>>, vector<8x128xf32>
      tpu.vector_store %arg5[%c0_18, %c0_19], %25 {strides = array<i32>} : memref<8x128xf32, #tpu.memory_space<vmem>>, vector<8x128xf32>,
    } else {
    }
    %c0 = arith.constant 0 : index
    %c0_1 = arith.constant 0 : index
    %3 = vector.load %arg2[%c0, %c0_1] : memref<8x256xf32, #tpu.memory_space<vmem>>, vector<8x128xf32>
    %c0_2 = arith.constant 0 : index
    %c0_3 = arith.constant 0 : index
    %4 = vector.load %arg3[%c0_2, %c0_3] : memref<8x256xf32, #tpu.memory_space<vmem>>, vector<8x128xf32>
    %5 = arith.mulf %3, %4 : vector<8x128xf32>
    %6 = arith.mulf %3, %3 : vector<8x128xf32>
    %7 = arith.mulf %4, %4 : vector<8x128xf32>
    %8 = arith.addf %6, %7 : vector<8x128xf32>
    %c0_4 = arith.constant 0 : index
    %c128 = arith.constant 128 : index
    %9 = vector.load %arg2[%c0_4, %c128] : memref<8x256xf32, #tpu.memory_space<vmem>>, vector<8x128xf32>
    %c0_5 = arith.constant 0 : index
    %c128_6 = arith.constant 128 : index
    %10 = vector.load %arg3[%c0_5, %c128_6] : memref<8x256xf32, #tpu.memory_space<vmem>>, vector<8x128xf32>
    %11 = arith.mulf %9, %10 : vector<8x128xf32>
    %12 = arith.addf %5, %11 : vector<8x128xf32>
    %13 = arith.mulf %9, %9 : vector<8x128xf32>
    %14 = arith.addf %8, %13 : vector<8x128xf32>
    %15 = arith.mulf %10, %10 : vector<8x128xf32>
    %16 = arith.addf %14, %15 : vector<8x128xf32>
    %c0_7 = arith.constant 0 : index
    %c0_8 = arith.constant 0 : index
    %17 = vector.load %arg4[%c0_7, %c0_8] : memref<8x128xf32, #tpu.memory_space<vmem>>, vector<8x128xf32>
    %18 = arith.addf %17, %12 : vector<8x128xf32>
    %c0_9 = arith.constant 0 : index
    %c0_10 = arith.constant 0 : index
    %19 = vector.load %arg4[%c0_9, %c0_10] : memref<8x128xf32, #tpu.memory_space<vmem>>, vector<8x128xf32>
    tpu.vector_store %arg4[%c0_9, %c0_10], %18 {strides = array<i32>} : memref<8x128xf32, #tpu.memory_space<vmem>>, vector<8x128xf32>,
    %c0_11 = arith.constant 0 : index
    %c0_12 = arith.constant 0 : index
    %20 = vector.load %arg5[%c0_11, %c0_12] : memref<8x128xf32, #tpu.memory_space<vmem>>, vector<8x128xf32>
    %21 = arith.addf %20, %16 : vector<8x128xf32>
    %c0_13 = arith.constant 0 : index
    %c0_14 = arith.constant 0 : index
    %22 = vector.load %arg5[%c0_13, %c0_14] : memref<8x128xf32, #tpu.memory_space<vmem>>, vector<8x128xf32>
    tpu.vector_store %arg5[%c0_13, %c0_14], %21 {strides = array<i32>} : memref<8x128xf32, #tpu.memory_space<vmem>>, vector<8x128xf32>,
    return
  }
  func.func @transform_0(%arg0: i32, %arg1: i32) -> (i32, i32) {
    %c0_i32 = arith.constant 0 : i32
    return %arg0, %arg1 : i32, i32
  }
  func.func @transform_1(%arg0: i32, %arg1: i32) -> (i32, i32) {
    %c0_i32 = arith.constant 0 : i32
    return %arg0, %arg1 : i32, i32
  }
  func.func @transform_2(%arg0: i32, %arg1: i32) -> (i32, i32) {
    %c0_i32 = arith.constant 0 : i32
    %c0_i32_0 = arith.constant 0 : i32
    return %arg0, %c0_i32 : i32, i32
  }
  func.func @transform_3(%arg0: i32, %arg1: i32) -> (i32, i32) {
    %c0_i32 = arith.constant 0 : i32
    %c0_i32_0 = arith.constant 0 : i32
    return %arg0, %c0_i32 : i32, i32
  }
}

</mosaic_0001>

<bundles_post_ra>
// kernel: tpu_custom_call.1
= control target key start
LH: loop header
LB: loop body
LE: loop exit
PB: predicated region body
PF: predicated region fallthrough
CT: control target
= control target key end

     0   :  { %9 = vsyncpa [#allocation3], 0  ;;  %s248_s0 = inlined_call_operand.hbm [shape: f32[8,256], index: 0, kind: input, shape index: {}]   ;;  %s249_s1 = inlined_call_operand.hbm [shape: f32[8,256], index: 1, kind: input, shape index: {}]   ;;  %s250_s2 = inlined_call_operand.hbm [shape: f32[8,128], index: 2, kind: output, shape index: {0}]   ;;  %s251_s3 = inlined_call_operand.hbm [shape: f32[8,128], index: 3, kind: output, shape index: {1}]  }
   0x1   :  { %10 = vsyncpa [#allocation6], 0 }
   0x2   :  { %11 = vsyncpa [#allocation4], 0 }
   0x3   :  { %12 = vsyncpa [#allocation9], 0  ;;  %s18_s14 = sshll.u32 %s248_s0, 4  ;;  %s212_s15 = smov [#allocation2]   ;;  %s19_s14 = int_to_ptr.hbm [resolvable:$true] %s18_s14 }
   0x4   :  { %s20_s16 = sshll.u32 %s212_s15, 4  ;;  %s29_s19 = sshll.u32 %s249_s1, 4  ;;  %s21_s16 = int_to_ptr.vmem [resolvable:$true] %s20_s16  ;;  %s30_s19 = int_to_ptr.hbm [resolvable:$true] %s29_s19 }
   0x5   :  { %23 = dma.hbm_to_vmem [thread:$0]  %s19_s14, 256, %s21_s16, [#allocation3]  }
   0x6   :  { %s213_s20 = smov [#allocation5]  }
   0x7   :  { %s31_s21 = sshll.u32 %s213_s20, 4  ;;  %s32_s21 = int_to_ptr.vmem [resolvable:$true] %s31_s21 }
   0x8   :  { %34 = dma.hbm_to_vmem [thread:$0]  %s30_s19, 256, %s32_s21, [#allocation6]  }
   0x9   :  { %204 = dma.done.wait [#allocation3], 256  }
   0xa   :  { %205 = vsyncadd [#allocation3], 4294967040 }
   0xb   :  { %206 = dma.done.wait [#allocation6], 256  }
   0xc   :  { %207 = vsyncadd [#allocation6], 4294967040  ;;  %v49_v0 = vld [vmem:[#allocation2] sm:$0xff]  ;;  %v50_v1 = vld [vmem:[#allocation5] sm:$0xff]  ;;  %s214_s0 = smov [#allocation7]   ;;  %s76_s24 = sshll.u32 %s250_s2, 4  ;;  %s77_s24 = int_to_ptr.hbm [resolvable:$true] %s76_s24 }
   0xd   :  { %v55_v2 = vld [vmem:[#allocation2 + $0x8] sm:$0xff]  ;;  %v51_v3 = vmul.f32 %v50_v1, %v49_v0  ;;  %v52_v4 = vmul.f32 %v49_v0, %v49_v0  ;;  %v53_v5 = vmul.f32 %v50_v1, %v50_v1  ;;  %v56_v6 = vld [vmem:[#allocation5 + $0x8] sm:$0xff]  ;;  %s74_s1 = sshll.u32 %s214_s0, 4  ;;  %s215_s25 = smov [#allocation8]   ;;  %s75_s1 = int_to_ptr.vmem [resolvable:$true] %s74_s1 }
   0xe   :  { %v59_v7 = vmul.f32 %v55_v2, %v55_v2  ;;  %v57_v8 = vmul.f32 %v56_v6, %v55_v2  ;;  %v61_v10 = vmul.f32 %v56_v6, %v56_v6  ;;  %s85_s26 = sshll.u32 %s215_s25, 4  ;;  %s87_s29 = sshll.u32 %s251_s3, 4  ;;  %s86_s26 = int_to_ptr.vmem [resolvable:$true] %s85_s26  ;;  %s88_s29 = int_to_ptr.hbm [resolvable:$true] %s87_s29 }
   0xf   :  { %v54_v9 = vadd.f32 %v53_v5, %v52_v4 }
  0x10   :  { %v58_v11 = vadd.f32 %v57_v8, %v51_v3 }
  0x11   :  { %v60_v12 = vadd.f32 %v59_v7, %v54_v9 }
  0x12   :  { %65 = vst [vmem:[#allocation7] sm:$0xff] %v58_v11 }
  0x13   :  { %v62_v13 = vadd.f32 %v61_v10, %v60_v12  ;;  %79 = dma.vmem_to_hbm [thread:$0]  %s75_s1, 128, %s77_s24, [#allocation4]  }
  0x15   :  { %68 = vst [vmem:[#allocation8] sm:$0xff] %v62_v13 }
  0x16   :  { %90 = dma.vmem_to_hbm [thread:$0]  %s86_s26, 128, %s88_s29, [#allocation9]  }
  0x17   :  { %208 = dma.done.wait [#allocation4], 128  }
  0x18   :  { %209 = vsyncadd [#allocation4], 4294967168 }
  0x19   :  { %210 = dma.done.wait [#allocation9], 128  }
  0x1a   :  { %211 = vsyncadd [#allocation9], 4294967168 }
  0x1b   :  { %99 = vsyncpa [#allocation3], 1 }
  0x1c   :  { %100 = vsyncpa [#allocation6], 1 }
  0x1d   :  { %101 = vsyncpa [#allocation4], 1 }
  0x1e   :  { %102 = vsyncpa [#allocation9], 1 }

</bundles_post_ra>
